<compile_context>
chip_gen: v6e
topology: v6e:2x2x1
jax: 0.10.0
libtpu: 0.0.40
codegen_flags: <defaults>
</compile_context>

<pallas_src>
import functools

import jax
import jax.numpy as jnp
from jax import lax
from jax.experimental import pallas as pl
from jax.experimental.pallas import tpu as pltpu


def _shift_lanes(x, shift):
    """Cyclic shift along the last axis: out[..., i] = x[..., (i + shift) % n].

    Written as two static lane slices + concat so the shift semantics are
    unambiguous (equivalent to a lane rotation on the XLU)."""
    n = x.shape[-1]
    k = shift % n
    if k == 0:
        return x
    return jnp.concatenate([x[..., k:], x[..., :k]], axis=-1)


def bottleneck_kernel(xp_ref, xm_ref, xn_ref, w1_ref, b1_ref, w2_ref, b2_ref,
                      w3_ref, b3_ref, o_ref, *, W, CH):
    """One (image, row-chunk) grid step. Data layout: (channels, flat spatial)."""
    t = pl.program_id(1)
    num_t = pl.num_programs(1)

    # ---- assemble the extended chunk of x: [last row of prev | mid | first row of next]
    x_mid = xm_ref[0]                               # (Cin, CH) f32, also the residual
    x_top = xp_ref[0, :, CH - W:CH]                 # (Cin, W)  halo row above
    x_bot = xn_ref[0, :, 0:W]                       # (Cin, W)  halo row below
    x_ext = jnp.concatenate([x_top, x_mid, x_bot], axis=1)      # (Cin, CH + 2W)

    # ---- conv1 (1x1) + folded bn1 + relu  (bf16 MXU, f32 accumulate) ----
    h1 = jnp.dot(w1_ref[...], x_ext.astype(jnp.bfloat16),
                 preferred_element_type=jnp.float32)            # (width, CH + 2W)
    h1 = jnp.maximum(h1 + b1_ref[...], 0.0)

    # Zero halo rows that fall outside the image (== conv2's zero padding).
    lane = lax.broadcasted_iota(jnp.int32, h1.shape, 1)
    in_img = jnp.logical_and(jnp.logical_or(lane >= W, t > 0),
                             jnp.logical_or(lane < CH + W, t < num_t - 1))
    h1 = jnp.where(in_img, h1, 0.0)

    # ---- conv2 (3x3, pad 1) as a single im2col matmul ----
    # Pre-mask the columns a left/right-looking tap would wrap across row ends,
    # then build the 9 shifted taps and stack them into (9*width, CH + 2W).
    col = lane % W
    v_mid = h1.astype(jnp.bfloat16)
    v_lft = jnp.where(col == W - 1, 0.0, h1).astype(jnp.bfloat16)   # kw = 0 taps
    v_rgt = jnp.where(col == 0, 0.0, h1).astype(jnp.bfloat16)       # kw = 2 taps
    variants = (v_lft, v_mid, v_rgt)
    taps = []
    for kh in range(3):
        for kw in range(3):
            taps.append(_shift_lanes(variants[kw], (kh - 1) * W + (kw - 1)))
    patches = jnp.concatenate(taps, axis=0)                         # (9*width, CH+2W) bf16

    h2 = jnp.dot(w2_ref[...], patches,
                 preferred_element_type=jnp.float32)[:, W:W + CH]   # (width, CH)
    h2 = jnp.maximum(h2 + b2_ref[...], 0.0)

    # ---- conv3 (1x1) + folded bn3 + residual add + relu ----
    h3 = jnp.dot(w3_ref[...], h2.astype(jnp.bfloat16),
                 preferred_element_type=jnp.float32)                # (Cout, CH)
    o_ref[0] = jnp.maximum(h3 + b3_ref[...] + x_mid, 0.0).astype(o_ref.dtype)


def _choose_tile_rows(H, W, target_lanes=512):
    """Rows per spatial tile.  The flattened chunk must be a multiple of 128
    lanes (Mosaic block-shape rule) unless it is the whole image."""
    cands = [th for th in range(1, H)
             if H % th == 0 and (th * W) % 128 == 0 and th * W >= target_lanes]
    return min(cands) if cands else H


def bottleneck_forward(x_nchw, w1, s1, b1, w2, s2, b2, w3, s3, b3,
                       tile_rows=None):
    """x_nchw: (N, Cin, H, W) f32.  w1: (Cin, width), w2: (3,3,width,width)
    [kh,kw,in,out], w3: (width, Cout).  s*/b* are eval-mode BN scale/bias."""
    N, Cin, H, W = x_nchw.shape
    width = w1.shape[1]
    Cout = w3.shape[1]
    if Cin != Cout:
        raise ValueError("identity residual needs inplanes == planes*expansion")

    f32 = jnp.float32
    # Fold BN scale into the conv weights (kernel only adds a bias), reorient
    # to (out, in) for the (C, HW) layout, cast weights to bf16 for the MXU.
    w1f = (w1.astype(f32) * s1.reshape(1, -1)).T.astype(jnp.bfloat16)     # (width, Cin)
    w2f = w2.astype(f32) * s2.reshape(1, 1, 1, -1)                        # (3,3,in,out)
    w2m = jnp.transpose(w2f, (3, 0, 1, 2)).reshape(
        width, 9 * width).astype(jnp.bfloat16)                            # (width, 9*width)
    w3f = (w3.astype(f32) * s3.reshape(1, -1)).T.astype(jnp.bfloat16)     # (Cout, width)
    b1c = b1.reshape(-1, 1).astype(f32)
    b2c = b2.reshape(-1, 1).astype(f32)
    b3c = b3.reshape(-1, 1).astype(f32)

    HW = H * W
    x_flat = x_nchw.astype(f32).reshape(N, Cin, HW)   # free reshape, no transpose

    if tile_rows is None:
        TH = _choose_tile_rows(H, W)
    else:
        TH = int(tile_rows)
        if H % TH or (TH != H and (TH * W) % 128):
            raise ValueError("tile_rows must divide H and give a chunk that is "
                             "a multiple of 128 lanes (or equal H)")
    T = H // TH
    CH = TH * W

    kernel = functools.partial(bottleneck_kernel, W=W, CH=CH)
    chunk = lambda n, t: (n, 0, t)
    prev_chunk = lambda n, t: (n, 0, jnp.maximum(t - 1, 0))
    next_chunk = lambda n, t: (n, 0, jnp.minimum(t + 1, T - 1))
    const = lambda n, t: (0, 0)

    out_flat = pl.pallas_call(
        kernel,
        out_shape=jax.ShapeDtypeStruct((N, Cout, HW), f32),
        grid_spec=pltpu.PrefetchScalarGridSpec(
            num_scalar_prefetch=0,
            grid=(N, T),
            in_specs=[
                pl.BlockSpec((1, Cin, CH), prev_chunk),   # chunk above (halo row)
                pl.BlockSpec((1, Cin, CH), chunk),        # this chunk (+ residual)
                pl.BlockSpec((1, Cin, CH), next_chunk),   # chunk below (halo row)
                pl.BlockSpec((width, Cin), const),        # folded conv1 weight (bf16)
                pl.BlockSpec((width, 1), const),          # bn1 bias
                pl.BlockSpec((width, 9 * width), const),  # folded conv2 weight (bf16)
                pl.BlockSpec((width, 1), const),          # bn2 bias
                pl.BlockSpec((Cout, width), const),       # folded conv3 weight (bf16)
                pl.BlockSpec((Cout, 1), const),           # bn3 bias
            ],
            out_specs=pl.BlockSpec((1, Cout, CH), chunk),
        ),
        compiler_params=pltpu.CompilerParams(
            dimension_semantics=("parallel", "parallel"),
            vmem_limit_bytes=32 * 1024 * 1024),
    )(x_flat, x_flat, x_flat, w1f, b1c, w2m, b2c, w3f, b3c)
    return out_flat.reshape(N, Cout, H, W)


# ---------------- pure-JAX reference (for correctness check) ----------------
def bottleneck_ref(x_nchw, w1, s1, b1, w2, s2, b2, w3, s3, b3):
    """XLA reference with the same BN fold + bf16 matmul inputs / f32 accum."""
    bf16, f32 = jnp.bfloat16, jnp.float32
    w1f = (w1 * s1.reshape(1, -1)).astype(bf16)
    w2f = (w2 * s2.reshape(1, 1, 1, -1)).astype(bf16)
    w3f = (w3 * s3.reshape(1, -1)).astype(bf16)
    x = jnp.transpose(x_nchw, (0, 2, 3, 1))                     # NHWC, f32
    h = jnp.einsum('nhwc,cd->nhwd', x.astype(bf16), w1f,
                   preferred_element_type=f32)
    h = jnp.maximum(h + b1.reshape(1, 1, 1, -1), 0.0)
    h = lax.conv_general_dilated(h.astype(bf16), w2f, (1, 1),
                                 ((1, 1), (1, 1)),
                                 dimension_numbers=('NHWC', 'HWIO', 'NHWC'),
                                 preferred_element_type=f32)
    h = jnp.maximum(h + b2.reshape(1, 1, 1, -1), 0.0)
    h = jnp.einsum('nhwc,cd->nhwd', h.astype(bf16), w3f,
                   preferred_element_type=f32)
    h = h + b3.reshape(1, 1, 1, -1)
    out = jnp.maximum(h + x, 0.0)
    return jnp.transpose(out, (0, 3, 1, 2))


def fold_bn(gamma, beta, mean, var, eps=1e-5):
    scale = gamma / jnp.sqrt(var + eps)
    bias = beta - mean * scale
    return scale.reshape(1, -1), bias.reshape(1, -1)


if __name__ == "__main__":
    key = jax.random.PRNGKey(0)
    keys = jax.random.split(key, 8)

    # Bottleneck(inplanes=16, planes=4): width=4, out_channels=16 (== inplanes)
    N, inplanes, H, W = 2, 16, 16, 16
    planes, expansion = 4, 4
    width = planes                      # base_width=64, groups=1
    Cout = planes * expansion

    x = jax.random.normal(keys[0], (N, inplanes, H, W), jnp.float32)

    # conv weights stored as [in, out] / [kh, kw, in, out] (HWIO)
    w1 = 0.2 * jax.random.normal(keys[1], (inplanes, width), jnp.float32)
    w2 = 0.2 * jax.random.normal(keys[2], (3, 3, width, width), jnp.float32)
    w3 = 0.2 * jax.random.normal(keys[3], (width, Cout), jnp.float32)

    def bn_params(k, c):
        k1, k2, k3, k4 = jax.random.split(k, 4)
        gamma = 1.0 + 0.1 * jax.random.normal(k1, (c,), jnp.float32)
        beta = 0.1 * jax.random.normal(k2, (c,), jnp.float32)
        mean = 0.1 * jax.random.normal(k3, (c,), jnp.float32)
        var = jnp.abs(jax.random.normal(k4, (c,), jnp.float32)) + 0.5
        return fold_bn(gamma, beta, mean, var)

    s1, b1 = bn_params(keys[4], width)
    s2, b2 = bn_params(keys[5], width)
    s3, b3 = bn_params(keys[6], Cout)

    # tile_rows=8 -> 128-lane chunks, grid (N, 2): exercises the spatial-tiling
    # / halo path as well as the image-border zero padding.
    out = bottleneck_forward(x, w1, s1, b1, w2, s2, b2, w3, s3, b3, tile_rows=8)
    out = jax.block_until_ready(out)

    ref = bottleneck_ref(x, w1, s1, b1, w2, s2, b2, w3, s3, b3)
    assert out.shape == (N, inplanes, H, W)
    assert jnp.allclose(out, ref, atol=5e-3, rtol=5e-3), (
        "mismatch vs reference, max abs err "
        f"{jnp.max(jnp.abs(out - ref))}")

    print("KERNEL_OK")
</pallas_src>

<mosaic_0001>
module attributes {stable_mosaic.version = 11 : i64} {
  func.func @bottleneck_kernel(%arg0: i32, %arg1: i32, %arg2: memref<1x16x128xf32, #tpu.memory_space<vmem>>, %arg3: memref<1x16x128xf32, #tpu.memory_space<vmem>>, %arg4: memref<1x16x128xf32, #tpu.memory_space<vmem>>, %arg5: memref<4x16xbf16, #tpu.memory_space<vmem>>, %arg6: memref<4x1xf32, #tpu.memory_space<vmem>>, %arg7: memref<4x36xbf16, #tpu.memory_space<vmem>>, %arg8: memref<4x1xf32, #tpu.memory_space<vmem>>, %arg9: memref<16x4xbf16, #tpu.memory_space<vmem>>, %arg10: memref<16x1xf32, #tpu.memory_space<vmem>>, %arg11: memref<1x16x128xf32, #tpu.memory_space<vmem>>) attributes {dimension_semantics = [#tpu.dimension_semantics<parallel>, #tpu.dimension_semantics<parallel>], iteration_bounds = array<i64: 2, 2>, scalar_prefetch = 0 : i64, scratch_operands = 0 : i64, tpu.core_type = #tpu.core_type<tc>, window_params = [{transform_indices = @transform_0, window_bounds = array<i64: 1, 16, 128>}, {transform_indices = @transform_1, window_bounds = array<i64: 1, 16, 128>}, {transform_indices = @transform_2, window_bounds = array<i64: 1, 16, 128>}, {pipeline_mode = #tpu.pipeline_mode<synchronous>, transform_indices = @transform_3, window_bounds = array<i64: 4, 16>}, {pipeline_mode = #tpu.pipeline_mode<synchronous>, transform_indices = @transform_4, window_bounds = array<i64: 4, 1>}, {pipeline_mode = #tpu.pipeline_mode<synchronous>, transform_indices = @transform_5, window_bounds = array<i64: 4, 36>}, {pipeline_mode = #tpu.pipeline_mode<synchronous>, transform_indices = @transform_6, window_bounds = array<i64: 4, 1>}, {pipeline_mode = #tpu.pipeline_mode<synchronous>, transform_indices = @transform_7, window_bounds = array<i64: 16, 4>}, {pipeline_mode = #tpu.pipeline_mode<synchronous>, transform_indices = @transform_8, window_bounds = array<i64: 16, 1>}, {transform_indices = @transform_9, window_bounds = array<i64: 1, 16, 128>}]} {
    %c0 = arith.constant 0 : index
    %c0_0 = arith.constant 0 : index
    %c0_1 = arith.constant 0 : index
    %0 = vector.load %arg3[%c0, %c0_0, %c0_1] : memref<1x16x128xf32, #tpu.memory_space<vmem>>, vector<1x16x128xf32>
    %1 = vector.shape_cast %0 : vector<1x16x128xf32> to vector<16x128xf32>
    %c0_2 = arith.constant 0 : index
    %c0_3 = arith.constant 0 : index
    %c112 = arith.constant 112 : index
    %2 = vector.load %arg2[%c0_2, %c0_3, %c112] : memref<1x16x128xf32, #tpu.memory_space<vmem>>, vector<1x16x16xf32>
    %3 = vector.shape_cast %2 : vector<1x16x16xf32> to vector<16x16xf32>
    %c0_4 = arith.constant 0 : index
    %c0_5 = arith.constant 0 : index
    %c0_6 = arith.constant 0 : index
    %4 = vector.load %arg4[%c0_4, %c0_5, %c0_6] : memref<1x16x128xf32, #tpu.memory_space<vmem>>, vector<1x16x16xf32>
    %5 = vector.shape_cast %4 : vector<1x16x16xf32> to vector<16x16xf32>
    %6 = tpu.concatenate %3, %1, %5 in 1 : vector<16x16xf32>, vector<16x128xf32>, vector<16x16xf32> -> vector<16x160xf32>
    %c0_7 = arith.constant 0 : index
    %c0_8 = arith.constant 0 : index
    %7 = vector.load %arg5[%c0_7, %c0_8] : memref<4x16xbf16, #tpu.memory_space<vmem>>, vector<4x16xbf16>
    %8 = arith.truncf %6 : vector<16x160xf32> to vector<16x160xbf16>
    %cst = arith.constant dense<0.000000e+00> : vector<4x160xf32>
    %9 = tpu.matmul %7, %8, %cst {dimension_numbers = #tpu.dot_dimension_numbers<[1], [0], [0], [1], [0, 0, 1, 1], [], []>} : vector<4x16xbf16>, vector<16x160xbf16>, vector<4x160xf32> -> vector<4x160xf32>
    %c0_9 = arith.constant 0 : index
    %c0_10 = arith.constant 0 : index
    %10 = vector.load %arg6[%c0_9, %c0_10] : memref<4x1xf32, #tpu.memory_space<vmem>>, vector<4x1xf32>
    %11 = vector.broadcast %10 : vector<4x1xf32> to vector<4x160xf32>
    %12 = arith.addf %9, %11 : vector<4x160xf32>
    %cst_11 = arith.constant 0.000000e+00 : f32
    %13 = vector.broadcast %cst_11 : f32 to vector<4x160xf32>
    %14 = arith.maximumf %12, %13 : vector<4x160xf32>
    %15 = tpu.iota {dimensions = array<i32: 1>} : vector<4x160xi32>
    %c16_i32 = arith.constant 16 : i32
    %16 = vector.broadcast %c16_i32 : i32 to vector<4x160xi32>
    %17 = arith.cmpi sge, %15, %16 : vector<4x160xi32>
    %c0_i32 = arith.constant 0 : i32
    %18 = arith.cmpi sgt, %arg1, %c0_i32 : i32
    %19 = vector.broadcast %18 : i1 to vector<4x160xi1>
    %20 = arith.ori %17, %19 : vector<4x160xi1>
    %c144_i32 = arith.constant 144 : i32
    %21 = vector.broadcast %c144_i32 : i32 to vector<4x160xi32>
    %22 = arith.cmpi slt, %15, %21 : vector<4x160xi32>
    %c1_i32 = arith.constant 1 : i32
    %23 = arith.cmpi slt, %arg1, %c1_i32 : i32
    %24 = vector.broadcast %23 : i1 to vector<4x160xi1>
    %25 = arith.ori %22, %24 : vector<4x160xi1>
    %26 = arith.andi %20, %25 : vector<4x160xi1>
    %cst_12 = arith.constant 0.000000e+00 : f32
    %27 = vector.broadcast %cst_12 : f32 to vector<4x160xf32>
    %28 = arith.select %26, %14, %27 : vector<4x160xi1>, vector<4x160xf32>
    %c16_i32_13 = arith.constant 16 : i32
    %c0_i32_14 = arith.constant 0 : i32
    %29 = arith.cmpi eq, %c16_i32_13, %c0_i32_14 : i32
    %c1_i32_15 = arith.constant 1 : i32
    %30 = arith.select %29, %c1_i32_15, %c16_i32_13 : i32
    %31 = vector.broadcast %30 : i32 to vector<4x160xi32>
    %32 = arith.remsi %15, %31 : vector<4x160xi32>
    %c0_i32_16 = arith.constant 0 : i32
    %33 = vector.broadcast %c0_i32_16 : i32 to vector<4x160xi32>
    %34 = arith.cmpi ne, %32, %33 : vector<4x160xi32>
    %c0_i32_17 = arith.constant 0 : i32
    %35 = vector.broadcast %c0_i32_17 : i32 to vector<4x160xi32>
    %36 = arith.cmpi slt, %32, %35 : vector<4x160xi32>
    %c0_i32_18 = arith.constant 0 : i32
    %37 = arith.cmpi slt, %30, %c0_i32_18 : i32
    %38 = vector.broadcast %37 : i1 to vector<4x160xi1>
    %39 = vector.broadcast %38 : vector<4x160xi1> to vector<4x160xi1>
    %40 = arith.xori %36, %39 : vector<4x160xi1>
    %41 = arith.andi %40, %34 : vector<4x160xi1>
    %42 = vector.broadcast %30 : i32 to vector<4x160xi32>
    %43 = arith.addi %32, %42 : vector<4x160xi32>
    %44 = arith.select %41, %43, %32 : vector<4x160xi1>, vector<4x160xi32>
    %45 = arith.truncf %28 : vector<4x160xf32> to vector<4x160xbf16>
    %c15_i32 = arith.constant 15 : i32
    %46 = vector.broadcast %c15_i32 : i32 to vector<4x160xi32>
    %47 = arith.cmpi eq, %44, %46 : vector<4x160xi32>
    %cst_19 = arith.constant 0.000000e+00 : f32
    %48 = vector.broadcast %cst_19 : f32 to vector<4x160xf32>
    %49 = arith.select %47, %48, %28 : vector<4x160xi1>, vector<4x160xf32>
    %50 = arith.truncf %49 : vector<4x160xf32> to vector<4x160xbf16>
    %c0_i32_20 = arith.constant 0 : i32
    %51 = vector.broadcast %c0_i32_20 : i32 to vector<4x160xi32>
    %52 = arith.cmpi eq, %44, %51 : vector<4x160xi32>
    %cst_21 = arith.constant 0.000000e+00 : f32
    %53 = vector.broadcast %cst_21 : f32 to vector<4x160xf32>
    %54 = arith.select %52, %53, %28 : vector<4x160xi1>, vector<4x160xf32>
    %55 = arith.truncf %54 : vector<4x160xf32> to vector<4x160xbf16>
    %56 = vector.extract_strided_slice %50 {offsets = [0, 143], sizes = [4, 17], strides = [1, 1]} : vector<4x160xbf16> to vector<4x17xbf16>
    %57 = vector.extract_strided_slice %50 {offsets = [0, 0], sizes = [4, 143], strides = [1, 1]} : vector<4x160xbf16> to vector<4x143xbf16>
    %58 = tpu.concatenate %56, %57 in 1 : vector<4x17xbf16>, vector<4x143xbf16> -> vector<4x160xbf16>
    %59 = vector.extract_strided_slice %45 {offsets = [0, 144], sizes = [4, 16], strides = [1, 1]} : vector<4x160xbf16> to vector<4x16xbf16>
    %60 = vector.extract_strided_slice %45 {offsets = [0, 0], sizes = [4, 144], strides = [1, 1]} : vector<4x160xbf16> to vector<4x144xbf16>
    %61 = tpu.concatenate %59, %60 in 1 : vector<4x16xbf16>, vector<4x144xbf16> -> vector<4x160xbf16>
    %62 = vector.extract_strided_slice %55 {offsets = [0, 145], sizes = [4, 15], strides = [1, 1]} : vector<4x160xbf16> to vector<4x15xbf16>
    %63 = vector.extract_strided_slice %55 {offsets = [0, 0], sizes = [4, 145], strides = [1, 1]} : vector<4x160xbf16> to vector<4x145xbf16>
    %64 = tpu.concatenate %62, %63 in 1 : vector<4x15xbf16>, vector<4x145xbf16> -> vector<4x160xbf16>
    %65 = vector.extract_strided_slice %50 {offsets = [0, 159], sizes = [4, 1], strides = [1, 1]} : vector<4x160xbf16> to vector<4x1xbf16>
    %66 = vector.extract_strided_slice %50 {offsets = [0, 0], sizes = [4, 159], strides = [1, 1]} : vector<4x160xbf16> to vector<4x159xbf16>
    %67 = tpu.concatenate %65, %66 in 1 : vector<4x1xbf16>, vector<4x159xbf16> -> vector<4x160xbf16>
    %68 = vector.extract_strided_slice %55 {offsets = [0, 1], sizes = [4, 159], strides = [1, 1]} : vector<4x160xbf16> to vector<4x159xbf16>
    %69 = vector.extract_strided_slice %55 {offsets = [0, 0], sizes = [4, 1], strides = [1, 1]} : vector<4x160xbf16> to vector<4x1xbf16>
    %70 = tpu.concatenate %68, %69 in 1 : vector<4x159xbf16>, vector<4x1xbf16> -> vector<4x160xbf16>
    %71 = vector.extract_strided_slice %50 {offsets = [0, 15], sizes = [4, 145], strides = [1, 1]} : vector<4x160xbf16> to vector<4x145xbf16>
    %72 = vector.extract_strided_slice %50 {offsets = [0, 0], sizes = [4, 15], strides = [1, 1]} : vector<4x160xbf16> to vector<4x15xbf16>
    %73 = tpu.concatenate %71, %72 in 1 : vector<4x145xbf16>, vector<4x15xbf16> -> vector<4x160xbf16>
    %74 = vector.extract_strided_slice %45 {offsets = [0, 16], sizes = [4, 144], strides = [1, 1]} : vector<4x160xbf16> to vector<4x144xbf16>
    %75 = vector.extract_strided_slice %45 {offsets = [0, 0], sizes = [4, 16], strides = [1, 1]} : vector<4x160xbf16> to vector<4x16xbf16>
    %76 = tpu.concatenate %74, %75 in 1 : vector<4x144xbf16>, vector<4x16xbf16> -> vector<4x160xbf16>
    %77 = vector.extract_strided_slice %55 {offsets = [0, 17], sizes = [4, 143], strides = [1, 1]} : vector<4x160xbf16> to vector<4x143xbf16>
    %78 = vector.extract_strided_slice %55 {offsets = [0, 0], sizes = [4, 17], strides = [1, 1]} : vector<4x160xbf16> to vector<4x17xbf16>
    %79 = tpu.concatenate %77, %78 in 1 : vector<4x143xbf16>, vector<4x17xbf16> -> vector<4x160xbf16>
    %80 = tpu.concatenate %58, %61, %64, %67, %45, %70, %73, %76, %79 in 0 : vector<4x160xbf16>, vector<4x160xbf16>, vector<4x160xbf16>, vector<4x160xbf16>, vector<4x160xbf16>, vector<4x160xbf16>, vector<4x160xbf16>, vector<4x160xbf16>, vector<4x160xbf16> -> vector<36x160xbf16>
    %c0_22 = arith.constant 0 : index
    %c0_23 = arith.constant 0 : index
    %81 = vector.load %arg7[%c0_22, %c0_23] : memref<4x36xbf16, #tpu.memory_space<vmem>>, vector<4x36xbf16>
    %cst_24 = arith.constant dense<0.000000e+00> : vector<4x160xf32>
    %82 = tpu.matmul %81, %80, %cst_24 {dimension_numbers = #tpu.dot_dimension_numbers<[1], [0], [0], [1], [0, 0, 1, 1], [], []>} : vector<4x36xbf16>, vector<36x160xbf16>, vector<4x160xf32> -> vector<4x160xf32>
    %83 = vector.extract_strided_slice %82 {offsets = [0, 16], sizes = [4, 128], strides = [1, 1]} : vector<4x160xf32> to vector<4x128xf32>
    %c0_25 = arith.constant 0 : index
    %c0_26 = arith.constant 0 : index
    %84 = vector.load %arg8[%c0_25, %c0_26] : memref<4x1xf32, #tpu.memory_space<vmem>>, vector<4x1xf32>
    %85 = vector.broadcast %84 : vector<4x1xf32> to vector<4x128xf32>
    %86 = arith.addf %83, %85 : vector<4x128xf32>
    %cst_27 = arith.constant 0.000000e+00 : f32
    %87 = vector.broadcast %cst_27 : f32 to vector<4x128xf32>
    %88 = arith.maximumf %86, %87 : vector<4x128xf32>
    %c0_28 = arith.constant 0 : index
    %c0_29 = arith.constant 0 : index
    %89 = vector.load %arg9[%c0_28, %c0_29] : memref<16x4xbf16, #tpu.memory_space<vmem>>, vector<16x4xbf16>
    %90 = arith.truncf %88 : vector<4x128xf32> to vector<4x128xbf16>
    %cst_30 = arith.constant dense<0.000000e+00> : vector<16x128xf32>
    %91 = tpu.matmul %89, %90, %cst_30 {dimension_numbers = #tpu.dot_dimension_numbers<[1], [0], [0], [1], [0, 0, 1, 1], [], []>} : vector<16x4xbf16>, vector<4x128xbf16>, vector<16x128xf32> -> vector<16x128xf32>
    %c0_31 = arith.constant 0 : index
    %c0_32 = arith.constant 0 : index
    %92 = vector.load %arg10[%c0_31, %c0_32] : memref<16x1xf32, #tpu.memory_space<vmem>>, vector<16x1xf32>
    %93 = vector.broadcast %92 : vector<16x1xf32> to vector<16x128xf32>
    %94 = arith.addf %91, %93 : vector<16x128xf32>
    %95 = arith.addf %94, %1 : vector<16x128xf32>
    %cst_33 = arith.constant 0.000000e+00 : f32
    %96 = vector.broadcast %cst_33 : f32 to vector<16x128xf32>
    %97 = arith.maximumf %95, %96 : vector<16x128xf32>
    %c0_34 = arith.constant 0 : index
    %c0_35 = arith.constant 0 : index
    %c0_36 = arith.constant 0 : index
    %98 = vector.load %arg11[%c0_34, %c0_35, %c0_36] : memref<1x16x128xf32, #tpu.memory_space<vmem>>, vector<1x16x128xf32>
    %99 = vector.shape_cast %98 : vector<1x16x128xf32> to vector<16x128xf32>
    %100 = vector.shape_cast %97 : vector<16x128xf32> to vector<1x16x128xf32>
    tpu.vector_store %arg11[%c0_34, %c0_35, %c0_36], %100 {strides = array<i32>} : memref<1x16x128xf32, #tpu.memory_space<vmem>>, vector<1x16x128xf32>,
    return
  }
  func.func @transform_0(%arg0: i32, %arg1: i32) -> (i32, i32, i32) {
    %c1_i32 = arith.constant 1 : i32
    %0 = arith.subi %arg1, %c1_i32 : i32
    %c0_i32 = arith.constant 0 : i32
    %1 = arith.maxsi %0, %c0_i32 : i32
    %c0_i32_0 = arith.constant 0 : i32
    %c0_i32_1 = arith.constant 0 : i32
    return %arg0, %c0_i32_0, %1 : i32, i32, i32
  }
  func.func @transform_1(%arg0: i32, %arg1: i32) -> (i32, i32, i32) {
    %c0_i32 = arith.constant 0 : i32
    %c0_i32_0 = arith.constant 0 : i32
    return %arg0, %c0_i32, %arg1 : i32, i32, i32
  }
  func.func @transform_2(%arg0: i32, %arg1: i32) -> (i32, i32, i32) {
    %c1_i32 = arith.constant 1 : i32
    %0 = arith.addi %arg1, %c1_i32 : i32
    %c1_i32_0 = arith.constant 1 : i32
    %1 = arith.minsi %0, %c1_i32_0 : i32
    %c0_i32 = arith.constant 0 : i32
    %c0_i32_1 = arith.constant 0 : i32
    return %arg0, %c0_i32, %1 : i32, i32, i32
  }
  func.func @transform_3(%arg0: i32, %arg1: i32) -> (i32, i32) {
    %c0_i32 = arith.constant 0 : i32
    %c0_i32_0 = arith.constant 0 : i32
    %c0_i32_1 = arith.constant 0 : i32
    return %c0_i32, %c0_i32_0 : i32, i32
  }
  func.func @transform_4(%arg0: i32, %arg1: i32) -> (i32, i32) {
    %c0_i32 = arith.constant 0 : i32
    %c0_i32_0 = arith.constant 0 : i32
    %c0_i32_1 = arith.constant 0 : i32
    return %c0_i32, %c0_i32_0 : i32, i32
  }
  func.func @transform_5(%arg0: i32, %arg1: i32) -> (i32, i32) {
    %c0_i32 = arith.constant 0 : i32
    %c0_i32_0 = arith.constant 0 : i32
    %c0_i32_1 = arith.constant 0 : i32
    return %c0_i32, %c0_i32_0 : i32, i32
  }
  func.func @transform_6(%arg0: i32, %arg1: i32) -> (i32, i32) {
    %c0_i32 = arith.constant 0 : i32
    %c0_i32_0 = arith.constant 0 : i32
    %c0_i32_1 = arith.constant 0 : i32
    return %c0_i32, %c0_i32_0 : i32, i32
  }
  func.func @transform_7(%arg0: i32, %arg1: i32) -> (i32, i32) {
    %c0_i32 = arith.constant 0 : i32
    %c0_i32_0 = arith.constant 0 : i32
    %c0_i32_1 = arith.constant 0 : i32
    return %c0_i32, %c0_i32_0 : i32, i32
  }
  func.func @transform_8(%arg0: i32, %arg1: i32) -> (i32, i32) {
    %c0_i32 = arith.constant 0 : i32
    %c0_i32_0 = arith.constant 0 : i32
    %c0_i32_1 = arith.constant 0 : i32
    return %c0_i32, %c0_i32_0 : i32, i32
  }
  func.func @transform_9(%arg0: i32, %arg1: i32) -> (i32, i32, i32) {
    %c0_i32 = arith.constant 0 : i32
    %c0_i32_0 = arith.constant 0 : i32
    return %arg0, %c0_i32, %arg1 : i32, i32, i32
  }
}

</mosaic_0001>

<bundles_post_ra>
// kernel: tpu_custom_call.1
= control target key start
LH: loop header
LB: loop body
LE: loop exit
PB: predicated region body
PF: predicated region fallthrough
CT: control target
= control target key end

     0   :  { %s2022_s0 = inlined_call_operand.hbm [shape: f32[2,16,256], index: 0, kind: input, shape index: {}]   ;;  %s2023_s1 = inlined_call_operand.hbm [shape: f32[2,16,256], index: 1, kind: input, shape index: {}]   ;;  %s2024_s2 = inlined_call_operand.hbm [shape: f32[2,16,256], index: 2, kind: input, shape index: {}]   ;;  %s2025_s3 = inlined_call_operand.vmem [shape: bf16[4,16], index: 3, kind: input, shape index: {}]   ;;  %s2026_s4 = inlined_call_operand.vmem [shape: f32[4,1], index: 4, kind: input, shape index: {}]   ;;  %s2027_s5 = inlined_call_operand.vmem [shape: bf16[4,36], index: 5, kind: input, shape index: {}]   ;;  %s2028_s6 = inlined_call_operand.vmem [shape: f32[4,1], index: 6, kind: input, shape index: {}]   ;;  %s2029_s7 = inlined_call_operand.vmem [shape: bf16[16,4], index: 7, kind: input, shape index: {}]   ;;  %s2030_s8 = inlined_call_operand.vmem [shape: f32[16,1], index: 8, kind: input, shape index: {}]   ;;  %s2031_s9 = inlined_call_operand.hbm [shape: f32[2,16,256], index: 9, kind: output, shape index: {}]  }
   0x1   :  { %2057 = sst [smem:[#allocation23_spill]] %s2022_s0 }
   0x2   :  { %2058 = sst [smem:[#allocation24_spill]] %s2023_s1 }
   0x3   :  { %2059 = sst [smem:[#allocation25_spill]] %s2025_s3 }
   0x4   :  { %2060 = sst [smem:[#allocation26_spill]] %s2026_s4 }
   0x5   :  { %2061 = sst [smem:[#allocation27_spill]] %s2027_s5 }
   0x6   :  { %2062 = sst [smem:[#allocation28_spill]] %s2028_s6 }
   0x7   :  { %2063 = sst [smem:[#allocation29_spill]] %s2029_s7 }
   0x8   :  { %2064 = sst [smem:[#allocation30_spill]] %s2030_s8 }
   0x9   :  { %2065 = sst [smem:[#allocation31_spill]] %s2031_s9 }
   0xa   :  { %14 = vsyncpa [#allocation3], 0 }
   0xb   :  { %16 = vsyncpa [#allocation3 + $0x1], 0 }
   0xc   :  { %17 = vsyncpa [#allocation6], 0 }
   0xd   :  { %19 = vsyncpa [#allocation6 + $0x1], 0 }
   0xe   :  { %20 = vsyncpa [#allocation4], 0 }
   0xf   :  { %22 = vsyncpa [#allocation4 + $0x1], 0  ;;  %s1575_s30 = smov 0   ;;  %s1577_s10 = smov 0  }
  0x10   :  { %s1579_s11 = smov 0   ;;  %s1581_s12 = smov 0  }
  0x11   :  { %s1583_s13 = smov 0   ;;  %s1585_s14 = smov 0  }
  0x12   :  { %s1587_s15 = smov 0   ;;  %s1589_s16 = smov 0  }
  0x13   :  { %s1591_s17 = smov 0   ;;  %s1593_s18 = smov 0  }
  0x14   :  { %s1595_s19 = smov 0   ;;  %s1597_s20 = smov 0  }
  0x15   :  { %s1599_s21 = smov 0   ;;  %s1601_s22 = smov 0  }
  0x16 LB: > { %2066 = sst [smem:[#allocation13_spill]] %s1460_s12  ;;  %s1646_s23 = sadd.s32 4294967295, %s1500_s22   ;;  %s1500_s22 = sphi %s1601_s22, %s28_s22   ;;  %s1496_s21 = sphi %s1599_s21, %s2137_s21   ;;  %s1492_s20 = sphi %s1597_s20, %s2136_s20   ;;  %s1488_s19 = sphi %s1595_s19, %s2135_s19   ;;  %s1484_s18 = sphi %s1593_s18, %s2122_s18   ;;  %s1480_s17 = sphi %s1591_s17, %s2134_s17   ;;  %s1476_s16 = sphi %s1589_s16, %s2133_s16   ;;  %s1472_s15 = sphi %s1587_s15, %s2132_s15   ;;  %s1468_s14 = sphi %s1585_s14, %s2131_s14   ;;  %s1464_s13 = sphi %s1583_s13, %s2130_s13   ;;  %s1460_s12 = sphi %s1581_s12, %s2129_s12   ;;  %s1456_s11 = sphi %s1579_s11, %s2128_s11   ;;  %s1452_s10 = sphi %s1577_s10, %s2127_s10   ;;  %s1448_s30 = sphi %s1575_s30, %s2126_s30  }
  0x17   : > { %2067 = sst [smem:[#allocation14_spill]] %s1480_s17  ;;  %s1049_s24 = sadd.s32 4294967294, %s1500_s22  }
  0x18   : > { %2068 = sst [smem:[#allocation15_spill]] %s1484_s18  ;;  %s37_s25 = sadd.s32 1, %s1492_s20 }
  0x19   : > { %2069 = sst [smem:[#allocation16_spill]] %s1488_s19  ;;  %s40_s26 = sadd.s32 1, %s1496_s21 }
  0x1a   : > { %2070 = sst [smem:[#allocation17_spill]] %s1492_s20  ;;  %p38_p0 = scmp.ge.s32.totalorder %s37_s25, 2 }
  0x1b   : > { %p2042_p1 = scmp.eq.s32.totalorder %s1500_s22, 0  ;;  %p2040_p2 = scmp.eq.s32.totalorder %s1646_s23, 0 }
  0x1c   : > { %s2139_s25 = smov (%p38_p0, %s37_s25), 0  ;;  %s2141_s26 = smov (!%p38_p0, %s40_s26), %s1496_s21 }
  0x1d   : > { %2071 = sst [smem:[#allocation18_spill]] %s2139_s25  ;;  %p90_p3 = scmp.ne.s32.totalorder %s1468_s14, %s1464_s13 }
  0x1e   : > { %p96_p4 = scmp.ne.s32.totalorder %s1464_s13, %s1460_s12  ;;  %p282_p5 = scmp.eq.s32.totalorder %s1646_s23, 3 }
  0x1f   : > { %p1668_p6 = por %p90_p3, %p2042_p1  ;;  %p288_p7 = scmp.eq.s32.totalorder %s1049_s24, 3 }
  0x20   : > { %p1674_p8 = por %p96_p4, %p2040_p2  ;;  %p1678_p9 = por %p282_p5, %p90_p3 }
  0x21   : > { %p1682_p10 = por %p288_p7, %p96_p4  ;;  %p2041_p11 = scmp.lt.s32.totalorder %s1500_s22, 4 }
  0x22   : > { %s2073_s27 = scalar_select %p1674_p8, 1, 0 }
  0x23   : > { %s2075_s28 = scalar_select %p1678_p9, 1, 0 }
  0x24   : > { %2074 = sst [smem:[#allocation19_spill]] %s2073_s27  ;;  %s1056_s9 = sshll.u32 %s1496_s21, 2 }
  0x25   : > { %2076 = sst [smem:[#allocation20_spill]] %s2075_s28  ;;  %s351_s7 = sand.u32 1, %s1500_s22  }
  0x26   : > { %s2077_s12 = scalar_select %p1682_p10, 1, 0 }
  0x27   : > { %s353_s19 = sand.u32 1, %s1468_s14   ;;  %s360_s5 = sadd.s32 %s1492_s20, %s1056_s9 }
  0x28   : > { %s1058_s24 = sshll.u32 %s353_s19, 4  ;;  %s1060_s8 = sshll.u32 %s360_s5, 7 }
  0x29   : > { %s2078_s1 = sld [smem:[#allocation24_spill]]  ;;  %s355_s4 = scalar_lea.vmem [#allocation5], %s1058_s24 }
  0x2a   : > { %s363_s27 = sshll.u32 %s355_s4, 4  ;;  %p1700_p12 = pnand %p2041_p11, %p1668_p6  ;;  %s364_s27 = int_to_ptr.vmem [resolvable:$true] %s363_s27 }
  0x2b   : > { %p1064_p13 = scmp.ge.s32.totalorder %s1500_s22, 1  ;;  %p396_p0 = scmp.lt.s32.totalorder %s1500_s22, 5 }
  0x2c   : > { %s1706_s19 = scalar_lea.sflag [#allocation6], %s351_s7  ;;  %p1262_p3 = pneg %p1700_p12 }
  0x2d   : > { %s1273_s5 = scalar_lea.vmem %s364_s27, 256  ;;  %s1502_s3 = smov [#allocation5]  }
  0x2e   : > { %p1274_p4 = scmp.ne.s32.totalorder %s364_s27, %s1273_s5  ;;  %s1278_s4 = sshll.u32 %s1502_s3, 4  ;;  %s1279_s4 = int_to_ptr.vmem [resolvable:$false] %s1278_s4 }
  0x2f   : > { %s1694_s18 = scalar_lea.hbm %s2078_s1, %s1060_s8  ;;  %s1280_s6 = scalar_lea.vmem %s1279_s4, 512 }
  0x30   : > { %p1276_p5 = pnand %p1274_p4, %p1262_p3  ;;  %p1281_p2 = scmp.lt.s32.totalorder %s364_s27, %s1279_s4 }
  0x31   : > { %p1282_p6 = scmp.lt.s32.totalorder %s1280_s6, %s1273_s5 }
  0x32   : > { %p1277_p7 = pneg %p1276_p5 }
  0x33   : > { %p1283_p11 = por %p1282_p6, %p1281_p2 }
  0x35   : > { %p1284_p1 = pnand %p1283_p11, %p1277_p7 }
  0x37   : > { %1287 = shalt.err (!%p1284_p1)
}
  0x38   : > { %s2043_s8 = smov 256   ;;  %s2045_s7 = smov 128  }
  0x39   : > { %s2047_s9 = smov 8   ;;  %p1721_p1 = pnand %p1064_p13, %p396_p0 }
  0x3a   : > { %1101 = dma.hbm_to_vmem [thread:$0]  (!%p1700_p12), %s1694_s18, 256, %s364_s27, %s1706_s19, %s2043_s8, %s2045_s7, %s2047_s9  }
  0x3b   : > { %s2080_s29 = scalar_select %p1721_p1, 1, 0 }
  0x3c   : > { %p42_p2 = scmp.ge.s32.totalorder %s2141_s26, 2  ;;  %s55_s28 = sadd.s32 1, %s1480_s17 }
  0x3d   : > { %p62_p11 = scmp.ne.s32.totalorder %s1480_s17, %s1476_s16  ;;  %p2082_p12 = scmp.eq.s32.totalorder %s1500_s22, 0 }
  0x3e   : > { %s2143_s26 = smov (%p42_p2, %s2141_s26), 0  ;;  %p68_p13 = scmp.ne.s32.totalorder %s1476_s16, %s1472_s15 }
  0x3f   : > { %2081 = sst [smem:[#allocation21_spill]] %s2143_s26  ;;  %s1731_s24 = ssub.s32 %s1496_s21, %s2143_s26 }
  0x40   : > { %p1738_p3 = por %p2082_p12, %p62_p11  ;;  %s2084_s27 = ssub.s32 %s1492_s20, %s2139_s25 }
  0x41   : > { %s80_s5 = sor.u32 %s2084_s27, %s1731_s24  ;;  %p2085_p0 = scmp.eq.s32.totalorder %s1646_s23, 0 }
  0x42   : > { %p2052_p5 = scmp.eq.s32.totalorder %s1731_s24, 0  ;;  %p81_p7 = scmp.eq.s32.totalorder %s80_s5, 0 }
  0x43   : > { %p1750_p4 = por %p2085_p0, %p68_p13  ;;  %s326_s4 = sand.u32 1, %s1480_s17  }
  0x44   : > { %s1759_s6 = scalar_select %p2052_p5, %s1480_s17, %s55_s28  }
  0x45   : > { %s2086_s3 = scalar_select %p1750_p4, 1, 0 }
  0x46   : > { %2087 = sst [smem:[#allocation22_spill]] %s1759_s6  ;;  %s2088_s8 = sadd.s32 1, %s1468_s14 }
  0x47   : > { %s1764_s7 = scalar_select %p81_p7, %s1468_s14, %s2088_s8  }
  0x48   : > { %s1054_s9 = sshll.u32 %s326_s4, 4  ;;  %s1442_s1 = sshll.u32 %s1496_s21, 9 }
  0x49   : > { %s2089_s0 = sld [smem:[#allocation23_spill]]  ;;  %s330_s25 = scalar_lea.vmem [#allocation2], %s1054_s9 }
  0x4a   : > { %s341_s5 = sshll.u32 %s330_s25, 4  ;;  %p2090_p6 = scmp.lt.s32.totalorder %s1500_s22, 4  ;;  %s342_s5 = int_to_ptr.vmem [resolvable:$true] %s341_s5 }
  0x4b   : > { %s327_s8 = scalar_lea.sflag [#allocation3], %s326_s4 }
  0x4c   : > { %p1778_p2 = pnand %p2090_p6, %p1738_p3 }
  0x4e   : > { %p1290_p12 = pneg %p1778_p2 }
  0x4f   : > { %s1772_s27 = scalar_lea.hbm %s2089_s0, %s1442_s1 }
  0x50   : > { %s1288_s20 = scalar_lea.hbm %s1772_s27, 256  ;;  %p1294_p7 = scmp.lt.s32.totalorder %s1772_s27, %s2089_s0 }
  0x51   : > { %p1289_p11 = scmp.ne.s32.totalorder %s1772_s27, %s1288_s20 }
  0x53   : > { %p1291_p13 = pnand %p1290_p12, %p1289_p11 }
  0x55   : > { %p1292_p0 = pneg %p1291_p13 }
  0x57   : > { %p1297_p5 = pnand %p1294_p7, %p1292_p0 }
  0x59   : > { %1300 = shalt.err (!%p1297_p5)
}
  0x5a   : > { %s1301_s25 = scalar_lea.vmem %s342_s5, 256  ;;  %s1506_s9 = smov [#allocation2]  }
  0x5b   : > { %p1302_p10 = scmp.ne.s32.totalorder %s342_s5, %s1301_s25  ;;  %s1306_s18 = sshll.u32 %s1506_s9, 4  ;;  %s1307_s18 = int_to_ptr.vmem [resolvable:$false] %s1306_s18 }
  0x5c   : > { %s1308_s4 = scalar_lea.vmem %s1307_s18, 512  ;;  %p1309_p9 = scmp.lt.s32.totalorder %s342_s5, %s1307_s18 }
  0x5d   : > { %p1304_p3 = pnand %p1302_p10, %p1290_p12  ;;  %p1310_p8 = scmp.lt.s32.totalorder %s1308_s4, %s1301_s25 }
  0x5f   : > { %p1305_p6 = pneg %p1304_p3  ;;  %p1311_p4 = por %p1310_p8, %p1309_p9 }
  0x61   : > { %p1312_p1 = pnand %p1311_p4, %p1305_p6 }
  0x63   : > { %1315 = shalt.err (!%p1312_p1)
}
  0x64   : > { %s2092_s20 = smov 8   ;;  %s2093_s26 = smov 128  }
  0x65   : > { %s2094_s15 = smov 256   ;;  %s117_s25 = sadd.s32 1, %s1456_s11 }
  0x66   : > { %1098 = dma.hbm_to_vmem [thread:$0]  (!%p1778_p2), %s1772_s27, 256, %s342_s5, %s327_s8, %s2094_s15, %s2093_s26, %s2092_s20  }
  0x67   : > { %p124_p8 = scmp.ne.s32.totalorder %s1456_s11, %s1452_s10  ;;  %p130_p9 = scmp.ne.s32.totalorder %s1452_s10, %s1448_s30 }
  0x68   : > { %s375_s28 = sand.u32 1, %s1456_s11   ;;  %p2095_p10 = scmp.eq.s32.totalorder %s1500_s22, 0 }
  0x69   : > { %p2096_p4 = scmp.eq.s32.totalorder %s1646_s23, 0  ;;  %s1061_s18 = sshll.u32 %s375_s28, 4 }
  0x6a   : > { %p126_p1 = por %p124_p8, %p2095_p10  ;;  %s1444_s4 = sadd.s32 128, %s1442_s1 }
  0x6b   : > { %p1806_p5 = por %p130_p9, %p2096_p4  ;;  %s377_s0 = scalar_lea.vmem [#allocation7], %s1061_s18 }
  0x6c   : > { %s388_s6 = sshll.u32 %s377_s0, 4  ;;  %p2098_p11 = scmp.eq.s32.totalorder %s1731_s24, 0  ;;  %s389_s6 = int_to_ptr.vmem [resolvable:$true] %s388_s6 }
  0x6d   : > { %s387_s30 = scalar_lea.hbm %s2024_s2, %s1444_s4  ;;  %p2099_p2 = scmp.lt.s32.totalorder %s1500_s22, 4 }
  0x6e   : > { %s1815_s17 = scalar_select %p2098_p11, %s1456_s11, %s117_s25  }
  0x6f   : > { %p1822_p12 = pnand %p2099_p2, %p126_p1  ;;  %s1329_s28 = scalar_lea.vmem %s389_s6, 256 }
  0x70   : > { %p1330_p0 = scmp.ne.s32.totalorder %s389_s6, %s1329_s28  ;;  %s1507_s0 = smov [#allocation7]  }
  0x71   : > { %p1318_p13 = pneg %p1822_p12  ;;  %s1334_s1 = sshll.u32 %s1507_s0, 4  ;;  %s1335_s1 = int_to_ptr.vmem [resolvable:$false] %s1334_s1 }
  0x72   : > { %s1336_s24 = scalar_lea.vmem %s1335_s1, 512  ;;  %p1337_p6 = scmp.lt.s32.totalorder %s389_s6, %s1335_s1 }
  0x73   : > { %p1332_p7 = pnand %p1330_p0, %p1318_p13  ;;  %p1338_p8 = scmp.lt.s32.totalorder %s1336_s24, %s1329_s28 }
  0x75   : > { %p1333_p3 = pneg %p1332_p7  ;;  %p1339_p9 = por %p1338_p8, %p1337_p6 }
  0x77   : > { %p1340_p10 = pnand %p1339_p9, %p1333_p3 }
  0x79   : > { %1343 = shalt.err (!%p1340_p10)
}
  0x7a   : > { %1104 = dma.hbm_to_vmem [thread:$0]  (!%p1822_p12), %s387_s30, 256, %s389_s6, %s1706_s19, %s2094_s15, %s2093_s26, %s2092_s20  }
  0x7b   : > { %p2101_p1 = scmp.ne.s32.totalorder %s2080_s29, 0 }
  0x7c   : > { %s402_s25 = sand.u32 (!%p2101_p1), 1, %s1476_s16   ;;  %p2102_p4 = scmp.ne.s32.totalorder (!%p2101_p1), %s2086_s3, 0 }
  0x7d   : > { %400 = sbr.rel (%p2101_p1) target bundleno = 1173 (0x495), region = 56  ;;  %s1065_s18 = sshll.u32 (!%p2101_p1), %s402_s25, 4 }
  0x7e   : > { %s403_s4 = scalar_lea.sflag (!%p2101_p1), [#allocation3], %s402_s25  ;;  %s406_s27 = scalar_lea.vmem (!%p2101_p1), [#allocation2], %s1065_s18 }
  0x82   : > { %1427 = dma.done.wait (%p2102_p4), %s403_s4, 256  }
  0x83   : > { %1429 = vsyncadd (%p2102_p4), %s403_s4, 4294967040  ;;  %s2103_s5 = sld [smem:[#allocation19_spill]]  ;;  %s411_s8 = sand.u32 1, %s1646_s23  }
  0x84   : > { %s413_s19 = sand.u32 1, %s1464_s13   ;;  %s412_s6 = scalar_lea.sflag [#allocation6], %s411_s8 }
  0x85   : > { %s1845_s29 = sshll.u32 %s413_s19, 4 }
  0x86   : > { %s415_s20 = scalar_lea.vmem [#allocation5], %s1845_s29 }
  0x89   : > { %p2104_p11 = scmp.ne.s32.totalorder %s2103_s5, 0 }
  0x8b   : > { %1431 = dma.done.wait (%p2104_p11), %s412_s6, 256  }
  0x8c   : > { %1433 = vsyncadd (%p2104_p11), %s412_s6, 4294967040  ;;  %s422_s3 = sand.u32 1, %s1452_s10  }
  0x8d   : > { %s1067_s26 = sshll.u32 %s422_s3, 4 }
  0x8e   : > { %s424_s15 = scalar_lea.vmem [#allocation7], %s1067_s26 }
  0x8f   : > { %1435 = dma.done.wait (%p1806_p5), %s412_s6, 256  }
  0x90   : > { %1437 = vsyncadd (%p1806_p5), %s412_s6, 4294967040  ;;  %v478_v0 = vld [vmem:[%s406_s27] sm:$0xff]  ;;  %v479_v1 = vld [vmem:[%s406_s27 + $0x8] sm:$0xff]  ;;  %v1508_v8 = vmov 0   ;;  %s1509_s23 = smov 16   ;;  %s2105_s28 = sld [smem:[#allocation26_spill]]  ;;  %v566_v27 = vlaneseq }
  0x91   : > { %v1857_v2 = vld [vmem:[%s415_s20] sm:$0xff]  ;;  %v1252_v3 = vpack.i.bf16 %v479_v1, %v478_v0  ;;  %v1859_v4 = vld [vmem:[%s415_s20 + $0x8] sm:$0xff]  ;;  %555 = vmatprep.mubr.bf16.mxu0 %v1508_v8  ;;  %1257 = vset.pattern.permute.xlu1 %v1508_v8  ;;  %s2106_s0 = sld [smem:[#allocation15_spill]]  ;;  %vm506_vm0 = vcmask 130048   ;;  %s1510_s27 = smov 127   ;;  %vm688_vm11 = vcmask 252928  }
  0x92   : > { %v480_v5 = vld [vmem:[%s424_s15] sm:$0xff]  ;;  %v481_v6 = vld [vmem:[%s424_s15 + $0x8] sm:$0xff]  ;;  %v1242_v7 = vpack.i.bf16 %v1859_v4, %v1857_v2  ;;  %797 = vmatprep.mubr.bf16.mxu1 %v1508_v8  ;;  %1258 = vset.pattern.permute.xlu0 %v1508_v8  ;;  %s2107_s25 = sld [smem:[#allocation25_spill]]  ;;  %v567_v28 = vand.u32 127, %v566_v27  ;;  %s1511_s5 = smov 112   ;;  %vm684_vm12 = vcmask 1039360  }
  0x93   : > { %1253 = vrot.lane.b32.xlu1 %v1252_v3, %s1509_s23  ;;  %v1247_v9 = vpack.i.bf16 %v481_v6, %v480_v5  ;;  %s1512_s8 = smov 113   ;;  %s1513_s6 = smov 31   ;;  %vm635_vm13 = vcmask 138240   ;;  %vm694_vm14 = vcmask 924672   ;;  %vm698_vm15 = vcmask 916480  }
  0x94   : > { %1243 = vrot.lane.b32.xlu0 %v1242_v7, %s1509_s23  ;;  %vm569_vm1 = vcmp.ge.s32.totalorder %v567_v28, 16  ;;  %v593_v31 = vand.u32 15, %v567_v28  ;;  %v568_v35 = vadd.s32 128, %v567_v28  ;;  %s1514_s20 = smov 17   ;;  %s1515_s3 = smov 15  }
  0x95   : > { %s1516_s26 = smov 111   ;;  %s1517_s15 = smov 1  }
  0x96   : > { %v514_v10 = vld [vmem:[%s2105_s28] sm:$0xf]  ;;  %vm621_vm4 = vcmp.eq.s32.totalorder %v593_v31, 0  ;;  %vm615_vm5 = vcmp.eq.s32.totalorder %v593_v31, 15  ;;  %vm578_vm6 = vcmp.lt.s32.totalorder %v568_v35, 144  ;;  %v600_v49 = vand.u32 15, %v568_v35 }
  0x97   : > { %517 = vperm.xlu1 %1257, %v514_v10   ;;  %p571_p5 = scmp.gt.s32.totalorder %s2106_s0, 0  ;;  %p579_p2 = scmp.lt.s32.totalorder %s2106_s0, 1 }
  0x98   : > { %1248 = vrot.lane.b32.xlu0 %v1247_v9, %s1509_s23  ;;  %v511_v26 = vld [vmem:[%s2107_s25] sm:$0x3]  ;;  %vm622_vm9 = vcmp.eq.s32.totalorder %v600_v49, 0  ;;  %vm616_vm10 = vcmp.eq.s32.totalorder %v600_v49, 15  ;;  %s1518_s9 = smov 97   ;;  %s2109_s25 = sld [smem:[#allocation30_spill]] }
  0x99   : > { %s572_s18 = scalar_select %p571_p5, 1, 0 }
  0x9a   : > { %s580_s4 = scalar_select %p579_p2, 1, 0 }
  0x9b   : > { %v573_v29 = vstv %s572_s18  ;;  %s468_s30 = scalar_lea.vmem [#allocation8], %s1845_s29  ;;  %s2113_s28 = sld [smem:[#allocation20_spill]] }
  0x9c   : > { %vm574_vm2 = vcmp.eq.s32.totalorder %v573_v29, 1  ;;  %v581_v37 = vstv %s580_s4  ;;  %s2114_s18 = sld [smem:[#allocation31_spill]]  ;;  %s1947_s29 = scalar_lea.sflag [#allocation4], %s413_s19 }
  0x9d   : > { %vm575_vm3 = vmor %vm569_vm1, %vm574_vm2  ;;  %vm582_vm7 = vcmp.eq.s32.totalorder %v581_v37, 1  ;;  %vm721_vm1 = vcmask 1041408   ;;  %vm662_vm2 = vcmask 121856  }
  0x9e   : > { %vm584_vm8 = vmor %vm578_vm6, %vm582_vm7  ;;  %v820_v56 = vld [vmem:[%s2109_s25] sm:$0xff]  ;;  %vm674_vm6 = vcmask 7168   ;;  %vm1520_vm7 = vmmov 0  }
  0xa1   : > { %p2116_p13 = scmp.ne.s32.totalorder %s2113_s28, 0 }
  0xa2   : > { %s2115_s4 = smov %s2114_s18 }
 0x105   : > { %v1254_v11 = vpop.permute.xlu1 %1253 }
 0x106   : > { %v1244_v12 = vpop.permute.xlu0 %1243  ;;  %v1256_v13 = vunpack.i.h.bf16 %v1254_v11  ;;  %v1255_v14 = vunpack.i.l.bf16 %v1254_v11 }
 0x107   : > { %v1246_v15 = vunpack.i.h.bf16 %v1244_v12  ;;  %v1245_v16 = vunpack.i.l.bf16 %v1244_v12 }
 0x109   : > { %v507_v20 = vsel %vm506_vm0, %v1255_v14, %v1245_v16  ;;  %v508_v21 = vsel %vm506_vm0, %v1256_v13, %v1246_v15 }
 0x10a   : > { %v1249_v17 = vpop.permute.xlu0 %1248  ;;  %v512_v25 = vpack.c.bf16 %v508_v21, %v507_v20 }
 0x10b   : > { %v1251_v18 = vunpack.i.h.bf16 %v1249_v17  ;;  %v1250_v19 = vunpack.i.l.bf16 %v1249_v17 }
 0x10d   : > { %v509_v22 = vsel %vm506_vm0, %v1245_v16, %v1250_v19  ;;  %v510_v23 = vsel %vm506_vm0, %v1246_v15, %v1251_v18 }
 0x10e   : > { %v513_v24 = vpack.c.bf16 %v510_v23, %v509_v22 }
 0x110   : > { %537 = vmatprep.subr.bf16.mxu0 %v513_v24 }
 0x111   : > { %538 = vmatpush1.bf16.msra.mxu0 %v512_v25 }
 0x112   : > { %v518_v30 = vpop.permute.xlu1 %517 }
 0x114   : > { %1069 = vmatmul.mubr.msk.bf16.vlgmr.msra.gmra.mxu0 %vm506_vm0, %v511_v26 }
 0x1d4   : > { %v557_v32 = vpop.f32.mrf.mxu0 }
 0x1d5   : > { %v558_v33 = vadd.f32 %v557_v32, %v518_v30 }
 0x1d6   : > { %v559_v34 = vpop.f32.mrf.mxu0 }
 0x1d7   : > { %v564_v36 = vmax.f32 %v558_v33, 0.0  ;;  %v560_v38 = vadd.f32 %v559_v34, %v518_v30 }
 0x1d8   : > { %v561_v39 = vpop.f32.mrf.mxu0 }
 0x1d9   : > { %v587_v40 = vsel %vm575_vm3, %v564_v36, 0.0  ;;  %v565_v45 = vmax.f32 %v560_v38, 0.0  ;;  %vm727_vm3 = vcmask 1043456  }
 0x1da   : > { %v623_v41 = vsel %vm621_vm4, 0.0, %v587_v40  ;;  %v562_v42 = vpop.f32.mrf.mxu0  ;;  %v1879_v43 = vpack.c.bf16 %v587_v40, %v587_v40  ;;  %v617_v46 = vsel %vm615_vm5, 0.0, %v587_v40  ;;  %vm702_vm4 = vcmask 908288  }
 0x1db   : > { %v625_v44 = vpack.c.bf16 %v623_v41, %v623_v41  ;;  %v619_v47 = vpack.c.bf16 %v617_v46, %v617_v46  ;;  %v588_v48 = vsel %vm584_vm8, %v565_v45, 0.0  ;;  %vm732_vm5 = vcmask 1045504  }
 0x1dc   : > { %645 = vrot.lane.b32.xlu1 %v1879_v43, %s1509_s23  ;;  %v1885_v50 = vpack.c.bf16 %v588_v48, %v588_v48  ;;  %v624_v51 = vsel %vm622_vm9, 0.0, %v588_v48  ;;  %v618_v53 = vsel %vm616_vm10, 0.0, %v588_v48  ;;  %vm844_vm8 = vcmask 31744  }
 0x1dd   : > { %680 = vrot.lane.b32.xlu0 %v625_v44, %s1510_s27  ;;  %v626_v52 = vpack.c.bf16 %v624_v51, %v624_v51  ;;  %v620_v54 = vpack.c.bf16 %v618_v53, %v618_v53 }
 0x1e0   : > { %696 = vrot.lane.b32.xlu1 %v1879_v43, %s1511_s5 }
 0x1e1   : > { %692 = vrot.lane.b32.xlu0 %v619_v47, %s1512_s8 }
 0x1e4   : > { %686 = vrot.lane.b32.xlu1 %v625_v44, %s1513_s6  ;;  %s1521_s6 = smov [#allocation8]  }
 0x1e5   : > { %642 = vrot.lane.b32.xlu0 %v1885_v50, %s1511_s5 }
 0x1e8   : > { %631 = vrot.lane.b32.xlu1 %v619_v47, %s1514_s20 }
 0x1e9   : > { %647 = vrot.lane.b32.xlu0 %v1885_v50, %s1509_s23  ;;  %s2108_s23 = sld [smem:[#allocation28_spill]] }
 0x1ec   : > { %658 = vrot.lane.b32.xlu1 %v625_v44, %s1515_s3 }
 0x1ed   : > { %682 = vrot.lane.b32.xlu0 %v626_v52, %s1510_s27  ;;  %s2110_s27 = sld [smem:[#allocation27_spill]] }
 0x1ef   : > { %v806_v55 = vld [vmem:[%s2108_s23] sm:$0xf]  ;;  %s913_s23 = sshll.u32 %s468_s30, 4  ;;  %s1937_s23 = int_to_ptr.vmem [resolvable:$true] %s913_s23 }
 0x1f0   : > { %700 = vrot.lane.b32.xlu1 %v625_v44, %s1516_s26 }
 0x1f1   : > { %628 = vrot.lane.b32.xlu0 %v620_v54, %s1512_s8  ;;  %s2111_s8 = sld [smem:[#allocation16_spill]] }
 0x1f3   : > { %v755_v51 = vld [vmem:[%s2110_s27] sm:$0x3] }
 0x1f4   : > { %670 = vrot.lane.b32.xlu1 %v619_v47, %s1517_s15 }
 0x1f5   : > { %655 = vrot.lane.b32.xlu0 %v626_v52, %s1516_s26 }
 0x1f8   : > { %660 = vrot.lane.b32.xlu1 %v626_v52, %s1515_s3  ;;  %v1519_v52 = vmov 0.0  }
 0x1f9   : > { %633 = vrot.lane.b32.xlu0 %v620_v54, %s1514_s20  ;;  %1081 = vmatprep.subr.bf16.mxu0 %v1519_v52  ;;  %s1348_s20 = sshll.u32 %s1521_s6, 4  ;;  %s1349_s20 = int_to_ptr.vmem [resolvable:$false] %s1348_s20 }
 0x1fa   : > { %1083 = vmatprep.mubr.msk.bf16.mxu0 %vm1520_vm7, %v1519_v52  ;;  %s1350_s3 = scalar_lea.vmem %s1349_s20, 512  ;;  %p1351_p3 = scmp.lt.s32.totalorder %s1937_s23, %s1349_s20 }
 0x1fc   : > { %668 = vrot.lane.b32.xlu1 %v620_v54, %s1518_s9 }
 0x1fd   : > { %672 = vrot.lane.b32.xlu0 %v620_v54, %s1517_s15  ;;  %s2112_s15 = sld [smem:[#allocation29_spill]] }
 0x201   : > { %809 = vperm.xlu0 %1258, %v806_v55  }
 0x205   : > { %824 = vperm.xlu0 %1258, %v820_v56  }
 0x24e   : > { %v646_v57 = vpop.permute.xlu1 %645 }
 0x24f   : > { %v681_v58 = vpop.permute.xlu0 %680 }
 0x252   : > { %v697_v59 = vpop.permute.xlu1 %696 }
 0x253   : > { %v693_v60 = vpop.permute.xlu0 %692 }
 0x256   : > { %v687_v61 = vpop.permute.xlu1 %686 }
 0x257   : > { %v643_v62 = vpop.permute.xlu0 %642 }
 0x258   : > { %v653_v12 = vsel %vm506_vm0, %v643_v62, %v646_v57  ;;  %v699_v20 = vsel %vm698_vm15, %v697_v59, %v643_v62 }
 0x259   : > { %v720_v21 = vrot.slane %v653_v12, 2  ;;  %v719_v30 = vrot.slane %v699_v20, 2  ;;  %v705_v42 = vrot.slane %v653_v12, 6 }
 0x25a   : > { %v632_v63 = vpop.permute.xlu1 %631 }
 0x25b   : > { %v648_v0 = vpop.permute.xlu0 %647 }
 0x25c   : > { %v650_v26 = vsel %vm506_vm0, %v646_v57, %v648_v0  ;;  %vm756_vm0 = vcmask 293888   ;;  %v821_v0 = vld [vmem:[%s2109_s25 + $0x8] sm:$0xff] }
 0x25d   : > { %v706_v34 = vrot.slane %v650_v26, 6 }
 0x25e   : > { %v659_v1 = vpop.permute.xlu1 %658 }
 0x25f   : > { %v683_v3 = vpop.permute.xlu0 %682 }
 0x260   : > { %v691_v5 = vsel %vm688_vm11, %v683_v3, %v687_v61  ;;  %v685_v6 = vsel %vm684_vm12, %v681_v58, %v683_v3 }
 0x261   : > { %v715_v7 = vrot.slane %v691_v5, 6  ;;  %v714_v13 = vrot.slane %v685_v6, 6 }
 0x262   : > { %v701_v8 = vpop.permute.xlu1 %700 }
 0x263   : > { %v629_v9 = vpop.permute.xlu0 %628  ;;  %v744_v17 = vsel %vm721_vm1, %v1885_v50, %v715_v7  ;;  %v741_v25 = vsel %vm721_vm1, %v1879_v43, %v714_v13  ;;  %v1259_v7 = vld [vmem:[%s2112_s15] sm:$0xff]  }
 0x264   : > { %v640_v10 = vsel %vm635_vm13, %v629_v9, %v632_v63  ;;  %v695_v11 = vsel %vm694_vm14, %v693_v60, %v629_v9 }
 0x265   : > { %v718_v14 = vrot.slane %v640_v10, 4  ;;  %v717_v15 = vrot.slane %v695_v11, 4  ;;  %v723_v46 = vsel %vm721_vm1, %v640_v10, %v705_v42 }
 0x266   : > { %v671_v16 = vpop.permute.xlu1 %670 }
 0x267   : > { %v656_v18 = vpop.permute.xlu0 %655  ;;  %v748_v19 = vsel %vm727_vm3, %v744_v17, %v718_v14  ;;  %v746_v29 = vsel %vm727_vm3, %v741_v25, %v717_v15 }
 0x268   : > { %v667_v22 = vsel %vm662_vm2, %v656_v18, %v659_v1  ;;  %v703_v23 = vsel %vm702_vm4, %v701_v8, %v656_v18  ;;  %v753_v28 = vsel %vm732_vm5, %v748_v19, %v720_v21  ;;  %v750_v35 = vsel %vm732_vm5, %v746_v29, %v719_v30 }
 0x269   : > { %1070 = vmatprep.subr.msk.bf16.mxu1 %vm721_vm1, %v667_v22  ;;  %v761_v24 = vsel %vm721_vm1, %v703_v23, 0  ;;  %v708_v38 = vrot.slane %v667_v22, 4 }
 0x26a   : > { %776 = vmatpush1.bf16.msra.mxu1 %v761_v24  ;;  %v661_v27 = vpop.permute.xlu1 %660 }
 0x26b   : > { %v663_v31 = vsel %vm662_vm2, %v659_v1, %v661_v27  ;;  %v634_v32 = vpop.permute.xlu0 %633  ;;  %777 = vmatprep.subr.bf16.mxu1 %v753_v28  ;;  %v729_v49 = vsel %vm727_vm3, %v723_v46, %v708_v38 }
 0x26c   : > { %v636_v33 = vsel %vm635_vm13, %v632_v63, %v634_v32  ;;  %v709_v36 = vrot.slane %v663_v31, 4 }
 0x26d   : > { %v726_v39 = vsel %vm721_vm1, %v636_v33, %v706_v34 }
 0x26e   : > { %v669_v37 = vpop.permute.xlu1 %668  ;;  %778 = vmatpush1.bf16.msra.mxu1 %v750_v35  ;;  %v731_v47 = vsel %vm727_vm3, %v726_v39, %v709_v36 }
 0x26f   : > { %v679_v40 = vsel %vm674_vm6, %v669_v37, %v671_v16  ;;  %v673_v41 = vpop.permute.xlu0 %672 }
 0x270   : > { %v711_v43 = vrot.slane %v679_v40, 2  ;;  %v675_v44 = vsel %vm674_vm6, %v671_v16, %v673_v41 }
 0x271   : > { %v712_v45 = vrot.slane %v675_v44, 2 }
 0x272   : > { %v734_v50 = vsel %vm732_vm5, %v729_v49, %v711_v43 }
 0x273   : > { %v737_v48 = vsel %vm732_vm5, %v731_v47, %v712_v45 }
 0x274   : > { %779 = vmatprep.subr.bf16.mxu1 %v737_v48 }
 0x275   : > { %780 = vmatpush1.bf16.msra.mxu1 %v734_v50 }
 0x278   : > { %1071 = vmatmul.mubr.msk.bf16.vlgmr.msra.gmra.mxu1 %vm756_vm0, %v755_v51 }
 0x27c   : > { %v810_v53 = vpop.permute.xlu0 %809 }
 0x280   : > { %v825_v8 = vpop.permute.xlu0 %824 }
 0x338   : > { %v799_v54 = vpop.f32.mrf.mxu1 }
 0x339   : > { %v812_v55 = vadd.f32 %v810_v53, %v799_v54 }
 0x33a   : > { %v801_v56 = vpop.f32.mrf.mxu1 }
 0x33b   : > { %v814_v57 = vmax.f32 %v812_v55, 0.0  ;;  %v813_v58 = vadd.f32 %v810_v53, %v801_v56 }
 0x33c   : > { %v803_v59 = vpop.f32.mrf.mxu1 }
 0x33d   : > { %v818_v60 = vpack.c.bf16 %v814_v57, %v814_v57  ;;  %v815_v61 = vmax.f32 %v813_v58, 0.0 }
 0x33e   : > { %v804_v62 = vpop.f32.mrf.mxu1 }
 0x33f   : > { %839 = vrot.lane.b32.xlu1 %v818_v60, %s1511_s5  ;;  %v819_v63 = vpack.c.bf16 %v815_v61, %v815_v61 }
 0x343   : > { %841 = vrot.lane.b32.xlu1 %v819_v63, %s1511_s5  ;;  %s1075_s5 = sshll.u32 %s2111_s8, 2  ;;  %s1344_s8 = scalar_lea.vmem %s1937_s23, 256 }
 0x344   : > { %s910_s9 = sadd.s32 %s2106_s0, %s1075_s5  ;;  %p1345_p12 = scmp.ne.s32.totalorder %s1937_s23, %s1344_s8 }
 0x345   : > { %s1076_s1 = sshll.u32 %s910_s9, 7  ;;  %p1352_p6 = scmp.lt.s32.totalorder %s1350_s3, %s1344_s8 }
 0x346   : > { %s1943_s27 = scalar_lea.hbm %s2114_s18, %s1076_s1  ;;  %p1346_p0 = pnand %p1345_p12, %p2116_p13 }
 0x347   : > { %829 = vperm.xlu1 %1257, %v821_v0   ;;  %p1353_p8 = por %p1352_p6, %p1351_p3 }
 0x348   : > { %p1347_p7 = pneg %p1346_p0 }
 0x34a   : > { %p1354_p9 = pnand %p1353_p8, %p1347_p7 }
 0x3b1   : > { %v840_v1 = vpop.permute.xlu1 %839 }
 0x3b5   : > { %v842_v3 = vpop.permute.xlu1 %841 }
 0x3b6   : > { %v843_v5 = vsel %vm698_vm15, %v840_v1, %v842_v3 }
 0x3b7   : > { %v849_v6 = vsel %vm721_vm1, %v843_v5, 0 }
 0x3b8   : > { %1082 = vmatpush3.bf16.msra.mxu0 %v849_v6 }
 0x3bb   : > { %1084 = vmatmul.mubr.msk.bf16.vlgmr.msra.gmra.mxu0 %vm844_vm8, %v1259_v7 }
 0x3c2   : > { %v830_v13 = vpop.permute.xlu1 %829 }
 0x47b   : > { %v885_v9 = vpop.f32.mrf.mxu0 }
 0x47c   : > { %v886_v10 = vadd.f32 %v885_v9, %v825_v8 }
 0x47d   : > { %v1085_v11 = vpop.f32.mrf.mxu0 }
 0x47e   : > { %v892_v12 = vadd.f32 %v886_v10, %v1857_v2 }
 0x47f   : > { %v888_v14 = vpop.f32.mrf.mxu0 }
 0x480   : > { %v894_v15 = vmax.f32 %v892_v12, 0.0  ;;  %v889_v16 = vadd.f32 %v888_v14, %v830_v13 }
 0x481   : > { %v1086_v17 = vpop.f32.mrf.mxu0 }
 0x482   : > { %896 = vst [vmem:[%s468_s30] sm:$0xff] %v894_v15  ;;  %v893_v18 = vadd.f32 %v889_v16, %v1859_v4 }
 0x484   : > { %v895_v2 = vmax.f32 %v893_v18, 0.0 }
 0x486   : > { %897 = vst [vmem:[%s468_s30 + $0x8] sm:$0xff] %v895_v2 }
 0x487   : > { %1357 = shalt.err (!%p1354_p9)
}
 0x488   : > { %s1358_s19 = scalar_lea.hbm %s1943_s27, 256  ;;  %s1362_s5 = scalar_lea.hbm %s2115_s4, 1024 }
 0x489   : > { %p1359_p10 = scmp.ne.s32.totalorder %s1943_s27, %s1358_s19  ;;  %p1363_p11 = scmp.lt.s32.totalorder %s1943_s27, %s2115_s4 }
 0x48a   : > { %p1364_p5 = scmp.lt.s32.totalorder %s1362_s5, %s1358_s19 }
 0x48b   : > { %p1360_p1 = pnand %p1359_p10, %p2116_p13 }
 0x48c   : > { %p1365_p2 = por %p1364_p5, %p1363_p11 }
 0x48d   : > { %p1361_p4 = pneg %p1360_p1 }
 0x48f   : > { %p1366_p12 = pnand %p1365_p2, %p1361_p4 }
 0x491   : > { %1369 = shalt.err (!%p1366_p12)
}
 0x492   : > { %s1522_s1 = smov 128   ;;  %s1523_s0 = smov 256  }
 0x493   : > { %s1524_s24 = smov 8  }
 0x494   : > { %1093 = dma.vmem_to_hbm [thread:$0]  (%p2116_p13), %s1937_s23, 256, %s1943_s27, %s1947_s29, %s1522_s1, %s1523_s0, %s1524_s24  }
 0x495 PF: > { %s2117_s18 = sld [smem:[#allocation13_spill]]  ;;  %p1110_p0 = scmp.ge.s32.totalorder %s1500_s22, 2 }
 0x496   : > { %p2118_p7 = scmp.ne.s32.totalorder %s2077_s12, 0 }
 0x498   : > { %p1106_p3 = pnand %p1110_p0, %p2118_p7 }
 0x49a   : > { %p1107_p6 = pneg %p1106_p3 }
 0x49b   : > { %s928_s8 = sand.u32 1, %s2117_s18  }
 0x49c   : > { %s929_s6 = scalar_lea.sflag [#allocation4], %s928_s8 }
 0x49d   : > { %1439 = dma.done.wait (%p1107_p6), %s929_s6, 256  }
 0x49e   : > { %1441 = vsyncadd (%p1107_p6), %s929_s6, 4294967040  ;;  %s28_s22 = sadd.s32 1, %s1500_s22   ;;  %s2120_s28 = sld [smem:[#allocation14_spill]] }
 0x49f   : > { %p1975_p8 = scmp.ge.s32.totalorder %s28_s22, 6   ;;  %s2121_s23 = sld [smem:[#allocation22_spill]] }
 0x4a0   : > { %s2122_s18 = sld [smem:[#allocation17_spill]]  ;;  %s2126_s30 = smov %s1452_s10 }
 0x4a1   : > { %s2123_s27 = sld [smem:[#allocation18_spill]]  ;;  %s2127_s10 = smov %s1456_s11 }
 0x4a2   : > { %s2124_s29 = sld [smem:[#allocation21_spill]]  ;;  %s2128_s11 = smov %s1815_s17 }
 0x4a3   : > { %s2129_s12 = smov %s1464_s13  ;;  %s2130_s13 = smov %s1468_s14 }
 0x4a4   : > { %s2131_s14 = smov %s1764_s7  ;;  %s2132_s15 = smov %s1476_s16 }
 0x4a5   : > { %s2133_s16 = smov %s2120_s28  ;;  %s2134_s17 = smov %s2121_s23 }
 0x4a6   : > { %s2135_s19 = smov %s1496_s21  ;;  %27 = sbr.rel (!%p1975_p8) target bundleno = 22 (0x16), region = 125 }
 0x4a7   : > { %s2136_s20 = smov %s2123_s27 }
 0x4a8   : > { %s2137_s21 = smov %s2124_s29 }
 0x4ab   :  { %934 = vsyncpa [#allocation3], 1 }
 0x4ac   :  { %936 = vsyncpa [#allocation3 + $0x1], 1 }
 0x4ad   :  { %937 = vsyncpa [#allocation6], 1 }
 0x4ae   :  { %939 = vsyncpa [#allocation6 + $0x1], 1 }
 0x4af   :  { %940 = vsyncpa [#allocation4], 1 }
 0x4b0   :  { %942 = vsyncpa [#allocation4 + $0x1], 1 }

</bundles_post_ra>
